<compile_context>
chip_gen: v6e
topology: v6e:2x2x1
jax: 0.10.0
libtpu: 0.0.40
codegen_flags: <defaults>
</compile_context>

<pallas_src>
import functools

import jax
import jax.numpy as jnp
from jax.experimental import pallas as pl
from jax.experimental.pallas import tpu as pltpu

HIDDEN = 64          # hard-coded in the PyTorch module (`hidden_size = 64`)
LN_EPS = 1e-5        # nn.LayerNorm default eps
_MAX_BATCH_TILE = 512  # keeps 2x double-buffered (tile x Din/H) f32 slabs well inside
                       # the default scoped-VMEM limit on v5e/v6e/v7x


def _round_up(n, m):
    return (n + m - 1) // m * m


def _fused_mlp_kernel(x_ref, w1_ref, bgb1_ref, wh_ref, bgbh_ref, o_ref, *, n_hidden):
    """Fused fc1 + n_hidden cloned hidden blocks, one batch tile per grid step.

    Each block: y = LayerNorm(ReLU(x @ W + b)) * gamma + beta.
    Inter-layer activations stay in f32; only the final store casts to o_ref.dtype.
    """

    def block(x, w, bgb):
        bgb = bgb.astype(jnp.float32)
        b, gamma, beta = bgb[0:1, :], bgb[1:2, :], bgb[2:3, :]
        # MXU matmul; preferred_element_type gives an f32 accumulator even if the
        # operands later become bf16 (MXU up-converts for free).
        h = jnp.dot(x, w, preferred_element_type=jnp.float32) + b
        h = jnp.maximum(h, 0.0)                                    # ReLU   (VPU)
        mean = jnp.mean(h, axis=-1, keepdims=True)                 # reduce (XLU)
        var = jnp.mean(jnp.square(h - mean), axis=-1, keepdims=True)
        hn = (h - mean) * jax.lax.rsqrt(var + LN_EPS)              # rsqrt  (EUP)
        return hn * gamma + beta

    y = block(x_ref[...], w1_ref[...], bgb1_ref[...])
    # layer_N is small & static -> fully unrolled loop with static weight indices,
    # weights already resident in VMEM (single stacked DMA).
    for l in range(n_hidden):
        y = block(y, wh_ref[l], bgbh_ref[l])
    o_ref[...] = y.astype(o_ref.dtype)
    # TODO(synk): output last dim is 64 (< 128 lanes) -> masked stores; a lane-dense
    # 128-wide packed output would need the caller to accept a different layout.


@functools.partial(jax.jit, static_argnames=("layer_N",))
def mlp_layer_forward(x, params, *, layer_N):
    B, Din = x.shape
    H = HIDDEN

    # Batch tile: >= 8 sublanes, as large as reasonable; pad batch up to a tile
    # multiple (padded garbage rows are independent under per-row LayerNorm and are
    # sliced off at the end).
    B_tile = min(_round_up(B, 8), _MAX_BATCH_TILE)
    B_pad = _round_up(B, B_tile)
    x_p = jnp.pad(x, ((0, B_pad - B), (0, 0))) if B_pad != B else x

    n_stack = params["wh"].shape[0]
    kernel = functools.partial(_fused_mlp_kernel, n_hidden=layer_N)

    out = pl.pallas_call(
        kernel,
        out_shape=jax.ShapeDtypeStruct((B_pad, H), x.dtype),
        grid_spec=pltpu.PrefetchScalarGridSpec(
            num_scalar_prefetch=0,
            grid=(B_pad // B_tile,),
            in_specs=[
                pl.BlockSpec((B_tile, Din), lambda i: (i, 0)),        # x tile
                pl.BlockSpec((Din, H), lambda i: (0, 0)),             # fc1 W
                pl.BlockSpec((3, H), lambda i: (0, 0)),               # fc1 b/gamma/beta
                pl.BlockSpec((n_stack, H, H), lambda i: (0, 0, 0)),   # stacked fc_h W
                pl.BlockSpec((n_stack, 3, H), lambda i: (0, 0, 0)),   # stacked fc_h b/g/b
            ],
            out_specs=pl.BlockSpec((B_tile, H), lambda i: (i, 0)),
        ),
        compiler_params=pltpu.CompilerParams(
            dimension_semantics=("parallel",),   # shard batch tiles across TCs (v7x)
        ),
    )(x_p, params["w1"], params["bgb1"], params["wh"], params["bgbh"])

    return out[:B] if B_pad != B else out


def _xavier_uniform(key, fan_in, fan_out, gain):
    bound = gain * jnp.sqrt(6.0 / (fan_in + fan_out))
    # PyTorch stores Linear weight as (out, in); we return the transposed (in, out)
    # layout directly, equivalent for xavier_uniform (symmetric in fans).
    return jax.random.uniform(key, (fan_in, fan_out), jnp.float32, -bound, bound)


def init_mlp_params(key, input_dim, layer_N):
    """Deterministic parameter init mirroring MLPLayer.__init__.

    use_orthogonal=False -> xavier_uniform_, use_ReLU=True -> gain = sqrt(2).
    Biases zero, LayerNorm gamma=1 / beta=0.  get_clones() deep-copies the already
    initialized fc_h, so all layer_N hidden blocks start with IDENTICAL weights --
    reproduced by tiling the same matrix into the stacked [layer_N, H, H] slab.
    """
    gain = jnp.sqrt(2.0)  # nn.init.calculate_gain('relu')
    k1, k2 = jax.random.split(key)

    def bgb_slab():
        return jnp.stack([
            jnp.zeros((HIDDEN,), jnp.float32),  # bias  = 0
            jnp.ones((HIDDEN,), jnp.float32),   # gamma = 1
            jnp.zeros((HIDDEN,), jnp.float32),  # beta  = 0
        ])

    w1 = _xavier_uniform(k1, input_dim, HIDDEN, gain)
    wh_single = _xavier_uniform(k2, HIDDEN, HIDDEN, gain)

    n_stack = max(layer_N, 1)  # keep a non-empty stack even for layer_N == 0
    wh = jnp.tile(wh_single[None], (n_stack, 1, 1))
    bgbh = jnp.tile(bgb_slab()[None], (n_stack, 1, 1))

    return dict(w1=w1, bgb1=bgb_slab(), wh=wh, bgbh=bgbh)


def _reference_forward(x, params, layer_N):
    def block(x, w, bgb):
        b, gamma, beta = bgb[0], bgb[1], bgb[2]
        h = jnp.maximum(x @ w + b, 0.0)
        mean = jnp.mean(h, axis=-1, keepdims=True)
        var = jnp.mean(jnp.square(h - mean), axis=-1, keepdims=True)
        return (h - mean) * jax.lax.rsqrt(var + LN_EPS) * gamma + beta

    y = block(x, params["w1"], params["bgb1"])
    for l in range(layer_N):
        y = block(y, params["wh"][l], params["bgbh"][l])
    return y


if __name__ == "__main__":
    key = jax.random.PRNGKey(0)
    k_x, k_p = jax.random.split(key)

    # Small shapes consistent with the module (hidden_size fixed at 64).
    batch, input_dim, layer_N = 8, 32, 2
    x = jax.random.normal(k_x, (batch, input_dim), jnp.float32)
    params = init_mlp_params(k_p, input_dim, layer_N)

    out = mlp_layer_forward(x, params, layer_N=layer_N)
    out = jax.block_until_ready(out)

    ref = _reference_forward(x, params, layer_N)
    assert out.shape == (batch, HIDDEN)
    assert jnp.allclose(out, ref, atol=1e-4, rtol=1e-4)

    # Also exercise the multi-tile / padded-batch grid path.
    x_big = jax.random.normal(k_x, (700, input_dim), jnp.float32)
    out_big = jax.block_until_ready(mlp_layer_forward(x_big, params, layer_N=layer_N))
    ref_big = _reference_forward(x_big, params, layer_N)
    assert out_big.shape == (700, HIDDEN)
    assert jnp.allclose(out_big, ref_big, atol=1e-4, rtol=1e-4)

    print("KERNEL_OK")
</pallas_src>

<mosaic_0001>
module attributes {stable_mosaic.version = 11 : i64} {
  func.func @_fused_mlp_kernel(%arg0: i32, %arg1: memref<8x32xf32, #tpu.memory_space<vmem>>, %arg2: memref<32x64xf32, #tpu.memory_space<vmem>>, %arg3: memref<3x64xf32, #tpu.memory_space<vmem>>, %arg4: memref<2x64x64xf32, #tpu.memory_space<vmem>>, %arg5: memref<2x3x64xf32, #tpu.memory_space<vmem>>, %arg6: memref<8x64xf32, #tpu.memory_space<vmem>>) attributes {dimension_semantics = [#tpu.dimension_semantics<parallel>], iteration_bounds = array<i64: 1>, scalar_prefetch = 0 : i64, scratch_operands = 0 : i64, tpu.core_type = #tpu.core_type<tc>, window_params = [{transform_indices = @transform_0, window_bounds = array<i64: 8, 32>}, {pipeline_mode = #tpu.pipeline_mode<synchronous>, transform_indices = @transform_1, window_bounds = array<i64: 32, 64>}, {pipeline_mode = #tpu.pipeline_mode<synchronous>, transform_indices = @transform_2, window_bounds = array<i64: 3, 64>}, {pipeline_mode = #tpu.pipeline_mode<synchronous>, transform_indices = @transform_3, window_bounds = array<i64: 2, 64, 64>}, {pipeline_mode = #tpu.pipeline_mode<synchronous>, transform_indices = @transform_4, window_bounds = array<i64: 2, 3, 64>}, {transform_indices = @transform_5, window_bounds = array<i64: 8, 64>}]} {
    %c0 = arith.constant 0 : index
    %c0_0 = arith.constant 0 : index
    %0 = vector.load %arg1[%c0, %c0_0] : memref<8x32xf32, #tpu.memory_space<vmem>>, vector<8x32xf32>
    %c0_1 = arith.constant 0 : index
    %c0_2 = arith.constant 0 : index
    %1 = vector.load %arg2[%c0_1, %c0_2] : memref<32x64xf32, #tpu.memory_space<vmem>>, vector<32x64xf32>
    %c0_3 = arith.constant 0 : index
    %c0_4 = arith.constant 0 : index
    %2 = vector.load %arg3[%c0_3, %c0_4] : memref<3x64xf32, #tpu.memory_space<vmem>>, vector<3x64xf32>
    %3 = vector.extract_strided_slice %2 {offsets = [0, 0], sizes = [1, 64], strides = [1, 1]} : vector<3x64xf32> to vector<1x64xf32>
    %4 = vector.extract_strided_slice %2 {offsets = [1, 0], sizes = [1, 64], strides = [1, 1]} : vector<3x64xf32> to vector<1x64xf32>
    %5 = vector.extract_strided_slice %2 {offsets = [2, 0], sizes = [1, 64], strides = [1, 1]} : vector<3x64xf32> to vector<1x64xf32>
    %cst = arith.constant dense<0.000000e+00> : vector<8x64xf32>
    %6 = tpu.matmul %0, %1, %cst {dimension_numbers = #tpu.dot_dimension_numbers<[1], [0], [0], [1], [0, 0, 1, 1], [], []>} : vector<8x32xf32>, vector<32x64xf32>, vector<8x64xf32> -> vector<8x64xf32>
    %7 = vector.broadcast %3 : vector<1x64xf32> to vector<8x64xf32>
    %8 = arith.addf %6, %7 : vector<8x64xf32>
    %cst_5 = arith.constant 0.000000e+00 : f32
    %9 = vector.broadcast %cst_5 : f32 to vector<8x64xf32>
    %10 = arith.maximumf %8, %9 : vector<8x64xf32>
    %cst_6 = arith.constant dense<0.000000e+00> : vector<8xf32>
    %11 = vector.multi_reduction <add>, %10, %cst_6 [1] : vector<8x64xf32> to vector<8xf32>
    %12 = vector.shape_cast %11 : vector<8xf32> to vector<8x1xf32>
    %cst_7 = arith.constant 6.400000e+01 : f32
    %13 = vector.broadcast %cst_7 : f32 to vector<8x1xf32>
    %14 = arith.divf %12, %13 : vector<8x1xf32>
    %15 = vector.broadcast %14 : vector<8x1xf32> to vector<8x64xf32>
    %16 = arith.subf %10, %15 : vector<8x64xf32>
    %17 = arith.mulf %16, %16 : vector<8x64xf32>
    %cst_8 = arith.constant dense<0.000000e+00> : vector<8xf32>
    %18 = vector.multi_reduction <add>, %17, %cst_8 [1] : vector<8x64xf32> to vector<8xf32>
    %19 = vector.shape_cast %18 : vector<8xf32> to vector<8x1xf32>
    %cst_9 = arith.constant 6.400000e+01 : f32
    %20 = vector.broadcast %cst_9 : f32 to vector<8x1xf32>
    %21 = arith.divf %19, %20 : vector<8x1xf32>
    %22 = vector.broadcast %14 : vector<8x1xf32> to vector<8x64xf32>
    %23 = arith.subf %10, %22 : vector<8x64xf32>
    %cst_10 = arith.constant 9.99999974E-6 : f32
    %24 = vector.broadcast %cst_10 : f32 to vector<8x1xf32>
    %25 = arith.addf %21, %24 : vector<8x1xf32>
    %26 = math.rsqrt %25 : vector<8x1xf32>
    %27 = vector.broadcast %26 : vector<8x1xf32> to vector<8x64xf32>
    %28 = arith.mulf %23, %27 : vector<8x64xf32>
    %29 = vector.broadcast %4 : vector<1x64xf32> to vector<8x64xf32>
    %30 = arith.mulf %28, %29 : vector<8x64xf32>
    %31 = vector.broadcast %5 : vector<1x64xf32> to vector<8x64xf32>
    %32 = arith.addf %30, %31 : vector<8x64xf32>
    %c0_11 = arith.constant 0 : index
    %c0_12 = arith.constant 0 : index
    %c0_13 = arith.constant 0 : index
    %33 = vector.load %arg4[%c0_11, %c0_12, %c0_13] : memref<2x64x64xf32, #tpu.memory_space<vmem>>, vector<1x64x64xf32>
    %34 = vector.shape_cast %33 : vector<1x64x64xf32> to vector<64x64xf32>
    %c0_14 = arith.constant 0 : index
    %c0_15 = arith.constant 0 : index
    %c0_16 = arith.constant 0 : index
    %35 = vector.load %arg5[%c0_14, %c0_15, %c0_16] : memref<2x3x64xf32, #tpu.memory_space<vmem>>, vector<1x3x64xf32>
    %36 = vector.shape_cast %35 : vector<1x3x64xf32> to vector<3x64xf32>
    %37 = vector.extract_strided_slice %36 {offsets = [0, 0], sizes = [1, 64], strides = [1, 1]} : vector<3x64xf32> to vector<1x64xf32>
    %38 = vector.extract_strided_slice %36 {offsets = [1, 0], sizes = [1, 64], strides = [1, 1]} : vector<3x64xf32> to vector<1x64xf32>
    %39 = vector.extract_strided_slice %36 {offsets = [2, 0], sizes = [1, 64], strides = [1, 1]} : vector<3x64xf32> to vector<1x64xf32>
    %cst_17 = arith.constant dense<0.000000e+00> : vector<8x64xf32>
    %40 = tpu.matmul %32, %34, %cst_17 {dimension_numbers = #tpu.dot_dimension_numbers<[1], [0], [0], [1], [0, 0, 1, 1], [], []>} : vector<8x64xf32>, vector<64x64xf32>, vector<8x64xf32> -> vector<8x64xf32>
    %41 = vector.broadcast %37 : vector<1x64xf32> to vector<8x64xf32>
    %42 = arith.addf %40, %41 : vector<8x64xf32>
    %cst_18 = arith.constant 0.000000e+00 : f32
    %43 = vector.broadcast %cst_18 : f32 to vector<8x64xf32>
    %44 = arith.maximumf %42, %43 : vector<8x64xf32>
    %cst_19 = arith.constant dense<0.000000e+00> : vector<8xf32>
    %45 = vector.multi_reduction <add>, %44, %cst_19 [1] : vector<8x64xf32> to vector<8xf32>
    %46 = vector.shape_cast %45 : vector<8xf32> to vector<8x1xf32>
    %cst_20 = arith.constant 6.400000e+01 : f32
    %47 = vector.broadcast %cst_20 : f32 to vector<8x1xf32>
    %48 = arith.divf %46, %47 : vector<8x1xf32>
    %49 = vector.broadcast %48 : vector<8x1xf32> to vector<8x64xf32>
    %50 = arith.subf %44, %49 : vector<8x64xf32>
    %51 = arith.mulf %50, %50 : vector<8x64xf32>
    %cst_21 = arith.constant dense<0.000000e+00> : vector<8xf32>
    %52 = vector.multi_reduction <add>, %51, %cst_21 [1] : vector<8x64xf32> to vector<8xf32>
    %53 = vector.shape_cast %52 : vector<8xf32> to vector<8x1xf32>
    %cst_22 = arith.constant 6.400000e+01 : f32
    %54 = vector.broadcast %cst_22 : f32 to vector<8x1xf32>
    %55 = arith.divf %53, %54 : vector<8x1xf32>
    %56 = vector.broadcast %48 : vector<8x1xf32> to vector<8x64xf32>
    %57 = arith.subf %44, %56 : vector<8x64xf32>
    %cst_23 = arith.constant 9.99999974E-6 : f32
    %58 = vector.broadcast %cst_23 : f32 to vector<8x1xf32>
    %59 = arith.addf %55, %58 : vector<8x1xf32>
    %60 = math.rsqrt %59 : vector<8x1xf32>
    %61 = vector.broadcast %60 : vector<8x1xf32> to vector<8x64xf32>
    %62 = arith.mulf %57, %61 : vector<8x64xf32>
    %63 = vector.broadcast %38 : vector<1x64xf32> to vector<8x64xf32>
    %64 = arith.mulf %62, %63 : vector<8x64xf32>
    %65 = vector.broadcast %39 : vector<1x64xf32> to vector<8x64xf32>
    %66 = arith.addf %64, %65 : vector<8x64xf32>
    %c1 = arith.constant 1 : index
    %c0_24 = arith.constant 0 : index
    %c0_25 = arith.constant 0 : index
    %67 = vector.load %arg4[%c1, %c0_24, %c0_25] : memref<2x64x64xf32, #tpu.memory_space<vmem>>, vector<1x64x64xf32>
    %68 = vector.shape_cast %67 : vector<1x64x64xf32> to vector<64x64xf32>
    %c1_26 = arith.constant 1 : index
    %c0_27 = arith.constant 0 : index
    %c0_28 = arith.constant 0 : index
    %69 = vector.load %arg5[%c1_26, %c0_27, %c0_28] : memref<2x3x64xf32, #tpu.memory_space<vmem>>, vector<1x3x64xf32>
    %70 = vector.shape_cast %69 : vector<1x3x64xf32> to vector<3x64xf32>
    %71 = vector.extract_strided_slice %70 {offsets = [0, 0], sizes = [1, 64], strides = [1, 1]} : vector<3x64xf32> to vector<1x64xf32>
    %72 = vector.extract_strided_slice %70 {offsets = [1, 0], sizes = [1, 64], strides = [1, 1]} : vector<3x64xf32> to vector<1x64xf32>
    %73 = vector.extract_strided_slice %70 {offsets = [2, 0], sizes = [1, 64], strides = [1, 1]} : vector<3x64xf32> to vector<1x64xf32>
    %cst_29 = arith.constant dense<0.000000e+00> : vector<8x64xf32>
    %74 = tpu.matmul %66, %68, %cst_29 {dimension_numbers = #tpu.dot_dimension_numbers<[1], [0], [0], [1], [0, 0, 1, 1], [], []>} : vector<8x64xf32>, vector<64x64xf32>, vector<8x64xf32> -> vector<8x64xf32>
    %75 = vector.broadcast %71 : vector<1x64xf32> to vector<8x64xf32>
    %76 = arith.addf %74, %75 : vector<8x64xf32>
    %cst_30 = arith.constant 0.000000e+00 : f32
    %77 = vector.broadcast %cst_30 : f32 to vector<8x64xf32>
    %78 = arith.maximumf %76, %77 : vector<8x64xf32>
    %cst_31 = arith.constant dense<0.000000e+00> : vector<8xf32>
    %79 = vector.multi_reduction <add>, %78, %cst_31 [1] : vector<8x64xf32> to vector<8xf32>
    %80 = vector.shape_cast %79 : vector<8xf32> to vector<8x1xf32>
    %cst_32 = arith.constant 6.400000e+01 : f32
    %81 = vector.broadcast %cst_32 : f32 to vector<8x1xf32>
    %82 = arith.divf %80, %81 : vector<8x1xf32>
    %83 = vector.broadcast %82 : vector<8x1xf32> to vector<8x64xf32>
    %84 = arith.subf %78, %83 : vector<8x64xf32>
    %85 = arith.mulf %84, %84 : vector<8x64xf32>
    %cst_33 = arith.constant dense<0.000000e+00> : vector<8xf32>
    %86 = vector.multi_reduction <add>, %85, %cst_33 [1] : vector<8x64xf32> to vector<8xf32>
    %87 = vector.shape_cast %86 : vector<8xf32> to vector<8x1xf32>
    %cst_34 = arith.constant 6.400000e+01 : f32
    %88 = vector.broadcast %cst_34 : f32 to vector<8x1xf32>
    %89 = arith.divf %87, %88 : vector<8x1xf32>
    %90 = vector.broadcast %82 : vector<8x1xf32> to vector<8x64xf32>
    %91 = arith.subf %78, %90 : vector<8x64xf32>
    %cst_35 = arith.constant 9.99999974E-6 : f32
    %92 = vector.broadcast %cst_35 : f32 to vector<8x1xf32>
    %93 = arith.addf %89, %92 : vector<8x1xf32>
    %94 = math.rsqrt %93 : vector<8x1xf32>
    %95 = vector.broadcast %94 : vector<8x1xf32> to vector<8x64xf32>
    %96 = arith.mulf %91, %95 : vector<8x64xf32>
    %97 = vector.broadcast %72 : vector<1x64xf32> to vector<8x64xf32>
    %98 = arith.mulf %96, %97 : vector<8x64xf32>
    %99 = vector.broadcast %73 : vector<1x64xf32> to vector<8x64xf32>
    %100 = arith.addf %98, %99 : vector<8x64xf32>
    %c0_36 = arith.constant 0 : index
    %c0_37 = arith.constant 0 : index
    %101 = vector.load %arg6[%c0_36, %c0_37] : memref<8x64xf32, #tpu.memory_space<vmem>>, vector<8x64xf32>
    tpu.vector_store %arg6[%c0_36, %c0_37], %100 {strides = array<i32>} : memref<8x64xf32, #tpu.memory_space<vmem>>, vector<8x64xf32>,
    return
  }
  func.func @transform_0(%arg0: i32) -> (i32, i32) {
    %c0_i32 = arith.constant 0 : i32
    %c0_i32_0 = arith.constant 0 : i32
    return %arg0, %c0_i32 : i32, i32
  }
  func.func @transform_1(%arg0: i32) -> (i32, i32) {
    %c0_i32 = arith.constant 0 : i32
    %c0_i32_0 = arith.constant 0 : i32
    %c0_i32_1 = arith.constant 0 : i32
    return %c0_i32, %c0_i32_0 : i32, i32
  }
  func.func @transform_2(%arg0: i32) -> (i32, i32) {
    %c0_i32 = arith.constant 0 : i32
    %c0_i32_0 = arith.constant 0 : i32
    %c0_i32_1 = arith.constant 0 : i32
    return %c0_i32, %c0_i32_0 : i32, i32
  }
  func.func @transform_3(%arg0: i32) -> (i32, i32, i32) {
    %c0_i32 = arith.constant 0 : i32
    %c0_i32_0 = arith.constant 0 : i32
    %c0_i32_1 = arith.constant 0 : i32
    %c0_i32_2 = arith.constant 0 : i32
    return %c0_i32, %c0_i32_0, %c0_i32_1 : i32, i32, i32
  }
  func.func @transform_4(%arg0: i32) -> (i32, i32, i32) {
    %c0_i32 = arith.constant 0 : i32
    %c0_i32_0 = arith.constant 0 : i32
    %c0_i32_1 = arith.constant 0 : i32
    %c0_i32_2 = arith.constant 0 : i32
    return %c0_i32, %c0_i32_0, %c0_i32_1 : i32, i32, i32
  }
  func.func @transform_5(%arg0: i32) -> (i32, i32) {
    %c0_i32 = arith.constant 0 : i32
    %c0_i32_0 = arith.constant 0 : i32
    return %arg0, %c0_i32 : i32, i32
  }
}

</mosaic_0001>

<bundles_post_ra>
// kernel: mlp_layer_forward.1
= control target key start
LH: loop header
LB: loop body
LE: loop exit
PB: predicated region body
PF: predicated region fallthrough
CT: control target
= control target key end

     0   :  { %10 = vsyncpa [#allocation3], 0  ;;  %s661_s0 = inlined_call_operand.vmem [shape: f32[8,32], index: 0, kind: input, shape index: {}]   ;;  %s662_s1 = inlined_call_operand.hbm [shape: f32[32,64], index: 1, kind: input, shape index: {}]   ;;  %s663_s2 = inlined_call_operand.vmem [shape: f32[3,64], index: 2, kind: input, shape index: {}]   ;;  %s664_s3 = inlined_call_operand.hbm [shape: f32[2,64,64], index: 3, kind: input, shape index: {}]   ;;  %s665_s4 = inlined_call_operand.vmem [shape: f32[2,3,64], index: 4, kind: input, shape index: {}]   ;;  %s666_s5 = inlined_call_operand.hbm [shape: f32[8,64], index: 5, kind: output, shape index: {}]  }
   0x1   :  { %11 = vsyncpa [#allocation6], 0 }
   0x2   :  { %12 = vsyncpa [#allocation4], 0  ;;  %s553_s18 = smov [#allocation2]  }
   0x3   :  { %s20_s19 = sshll.u32 %s553_s18, 4  ;;  %s21_s19 = int_to_ptr.vmem [resolvable:$true] %s20_s19 }
   0x4   :  { %s495_s20 = scalar_lea.vmem %s21_s19, 512  ;;  %p500_p1 = scmp.lt.s32.totalorder %s21_s19, %s21_s19 }
   0x5   :  { %p496_p0 = scmp.ne.s32.totalorder %s21_s19, %s495_s20  ;;  %p501_p2 = scmp.lt.s32.totalorder %s495_s20, %s495_s20 }
   0x7   :  { %p502_p3 = por %p501_p2, %p500_p1 }
   0x9   :  { %p503_p4 = pnand %p502_p3, %p496_p0 }
   0xb   :  { %506 = shalt.err (!%p503_p4)
}
   0xc   :  { %s554_s21 = smov 128   ;;  %s555_s22 = smov 8  }
   0xd   :  { %26 = dma.hbm_to_vmem [thread:$0]  %s662_s1, 512, %s21_s19, [#allocation3], %s554_s21, %s554_s21, %s555_s22  }
   0xe   :  { %s556_s25 = smov [#allocation5]  }
   0xf   :  { %s34_s26 = sshll.u32 %s556_s25, 4  ;;  %s35_s26 = int_to_ptr.vmem [resolvable:$true] %s34_s26 }
  0x10   :  { %s515_s27 = scalar_lea.vmem %s35_s26, 2048  ;;  %p520_p6 = scmp.lt.s32.totalorder %s35_s26, %s35_s26 }
  0x11   :  { %p516_p5 = scmp.ne.s32.totalorder %s35_s26, %s515_s27  ;;  %p521_p7 = scmp.lt.s32.totalorder %s515_s27, %s515_s27 }
  0x13   :  { %p522_p8 = por %p521_p7, %p520_p6 }
  0x15   :  { %p523_p9 = pnand %p522_p8, %p516_p5 }
  0x17   :  { %526 = shalt.err (!%p523_p9)
}
  0x18   :  { %40 = dma.hbm_to_vmem [thread:$0]  %s664_s3, 2048, %s35_s26, [#allocation6], %s554_s21, %s554_s21, %s555_s22  }
  0x19   :  { %547 = dma.done.wait [#allocation3], 512  }
  0x1a   :  { %548 = vsyncadd [#allocation3], 4294966784 }
  0x1b   :  { %549 = dma.done.wait [#allocation6], 2048  }
  0x1c   :  { %550 = vsyncadd [#allocation6], 4294965248  ;;  %v557_v0 = vmov 0.0   ;;  %vm558_vm0 = vmmov 0   ;;  %v53_v1 = vld [vmem:[#allocation2 + $0x18] sm:$0xff]  ;;  %v52_v2 = vld [vmem:[#allocation2 + $0x10] sm:$0xff]  ;;  %v55_v6 = vlaneseq }
  0x1d   :  { %425 = vmatprep.subr.mxu0 %v557_v0  ;;  %433 = vmatprep.mubr.msk.f32.mxu0 %vm558_vm0, %v557_v0  ;;  %v51_v3 = vld [vmem:[#allocation2 + $0x8] sm:$0xff]  ;;  %v50_v4 = vld [vmem:[#allocation2] sm:$0xff]  ;;  %vm59_vm1 = vcmask 261120   ;;  %vm134_vm2 = vcmask 523264   ;;  %v166_v21 = vld [vmem:[#allocation5 + $0x38] sm:$0xff] }
  0x1e   :  { %436 = vmatprep.subr.mxu1 %v557_v0  ;;  %452 = vmatprep.mubr.msk.f32.mxu1 %vm558_vm0, %v557_v0  ;;  %v49_v5 = vld [vmem:[%s661_s0] sm:$0xff]  ;;  %v56_v7 = vshrl.u32 %v55_v6, 7  ;;  %v165_v22 = vld [vmem:[#allocation5 + $0x30] sm:$0xff]  ;;  %v164_v23 = vld [vmem:[#allocation5 + $0x28] sm:$0xff] }
  0x1f   :  { %426 = vmatpush3.msra.mxu0 %v53_v1  ;;  %v54_v9 = vld [vmem:[%s663_s2] sm:$0x7]  ;;  %437 = vmatpush3.msra.mxu1 %v166_v21  ;;  %v162_v25 = vld [vmem:[#allocation5 + $0x18] sm:$0xff]  ;;  %v161_v26 = vld [vmem:[#allocation5 + $0x10] sm:$0xff] }
  0x20   :  { %427 = vmatprep.subr.mxu0 %v557_v0  ;;  %v611_v8 = vsub.s32 0, %v56_v7  ;;  %438 = vmatprep.subr.mxu1 %v557_v0  ;;  %v163_v24 = vld [vmem:[#allocation5 + $0x20] sm:$0xff]  ;;  %v160_v27 = vld [vmem:[#allocation5 + $0x8] sm:$0xff]  ;;  %v626_v32 = vsub.s32 1, %v56_v7  ;;  %v628_v33 = vsub.s32 2, %v56_v7  ;;  %v277_v52 = vld [vmem:[#allocation5 + $0x78] sm:$0xff] }
  0x21   :  { %428 = vmatpush3.msra.mxu0 %v52_v2  ;;  %439 = vmatpush3.msra.mxu1 %v165_v22  ;;  %v159_v28 = vld [vmem:[#allocation5] sm:$0xff]  ;;  %v276_v53 = vld [vmem:[#allocation5 + $0x70] sm:$0xff]  ;;  %v275_v54 = vld [vmem:[#allocation5 + $0x68] sm:$0xff] }
  0x22   :  { %429 = vmatprep.subr.mxu0 %v557_v0  ;;  %v58_v10 = vrot.slane %v54_v9, %v611_v8  ;;  %440 = vmatprep.subr.mxu1 %v557_v0  ;;  %v152_v34 = vrot.slane %v54_v9, %v626_v32  ;;  %v157_v36 = vrot.slane %v54_v9, %v628_v33  ;;  %v167_v40 = vld [vmem:[%s665_s4] sm:$0x7]  ;;  %v273_v56 = vld [vmem:[#allocation5 + $0x58] sm:$0xff]  ;;  %v272_v57 = vld [vmem:[#allocation5 + $0x50] sm:$0xff] }
  0x23   :  { %430 = vmatpush3.msra.mxu0 %v51_v3  ;;  %441 = vmatpush3.msra.mxu1 %v164_v23  ;;  %v171_v41 = vrot.slane %v167_v40, %v611_v8  ;;  %v274_v55 = vld [vmem:[#allocation5 + $0x60] sm:$0xff]  ;;  %v271_v58 = vld [vmem:[#allocation5 + $0x48] sm:$0xff]  ;;  %v262_v63 = vrot.slane %v167_v40, %v626_v32  ;;  %v267_v2 = vrot.slane %v167_v40, %v628_v33 }
  0x24   :  { %431 = vmatprep.subr.mxu0 %v557_v0  ;;  %442 = vmatprep.subr.mxu1 %v557_v0  ;;  %v270_v59 = vld [vmem:[#allocation5 + $0x40] sm:$0xff] }
  0x25   :  { %432 = vmatpush3.msra.mxu0 %v50_v4  ;;  %443 = vmatpush3.msra.mxu1 %v163_v24  ;;  %v400_v6 = vld [vmem:[%s665_s4 + $0x4] sm:$0x7]  ;;  %s559_s4 = smov [#allocation7]  }
  0x26   :  { %434 = vmatmul.mubr.msk.f32.vlgmr.msra.gmra.mxu0 %vm59_vm1, %v49_v5  ;;  %455 = vmatprep.subr.mxu0 %v557_v0  ;;  %v379_v22 = vrot.slane %v400_v6, %v628_v33  ;;  %s388_s9 = sshll.u32 %s559_s4, 4  ;;  %s389_s9 = int_to_ptr.vmem [resolvable:$true] %s388_s9 }
  0x27   :  { %471 = vmatprep.mubr.msk.f32.mxu0 %vm558_vm0, %v557_v0  ;;  %444 = vmatprep.subr.mxu1 %v557_v0  ;;  %s527_s10 = scalar_lea.vmem %s389_s9, 128  ;;  %p532_p11 = scmp.lt.s32.totalorder %s389_s9, %s389_s9 }
  0x28   :  { %445 = vmatpush3.msra.mxu1 %v162_v25  ;;  %456 = vmatpush3.msra.mxu0 %v277_v52  ;;  %p528_p10 = scmp.ne.s32.totalorder %s389_s9, %s527_s10  ;;  %p533_p12 = scmp.lt.s32.totalorder %s527_s10, %s527_s10 }
  0x29   :  { %446 = vmatprep.subr.mxu1 %v557_v0  ;;  %457 = vmatprep.subr.mxu0 %v557_v0 }
  0x2a   :  { %447 = vmatpush3.msra.mxu1 %v161_v26  ;;  %458 = vmatpush3.msra.mxu0 %v276_v53  ;;  %p534_p13 = por %p533_p12, %p532_p11 }
  0x2b   :  { %448 = vmatprep.subr.mxu1 %v557_v0  ;;  %459 = vmatprep.subr.mxu0 %v557_v0 }
  0x2c   :  { %449 = vmatpush3.msra.mxu1 %v160_v27  ;;  %460 = vmatpush3.msra.mxu0 %v275_v54  ;;  %p535_p0 = pnand %p534_p13, %p528_p10 }
  0x2d   :  { %450 = vmatprep.subr.mxu1 %v557_v0  ;;  %461 = vmatprep.subr.mxu0 %v557_v0 }
  0x2e   :  { %451 = vmatpush3.msra.mxu1 %v159_v28  ;;  %462 = vmatpush3.msra.mxu0 %v274_v55 }
  0x2f   :  { %463 = vmatprep.subr.mxu0 %v557_v0 }
  0x30   :  { %464 = vmatpush3.msra.mxu0 %v273_v56 }
  0x31   :  { %465 = vmatprep.subr.mxu0 %v557_v0 }
  0x32   :  { %466 = vmatpush3.msra.mxu0 %v272_v57 }
  0x33   :  { %467 = vmatprep.subr.mxu0 %v557_v0 }
  0x34   :  { %468 = vmatpush3.msra.mxu0 %v271_v58 }
  0x35   :  { %469 = vmatprep.subr.mxu0 %v557_v0  ;;  %v283_v0 = vrot.slane %v400_v6, %v611_v8  ;;  %v374_v8 = vrot.slane %v400_v6, %v626_v32 }
  0x36   :  { %470 = vmatpush3.msra.mxu0 %v270_v59 }
  0xe6   :  { %v129_v11 = vpop.f32.mrf.mxu0 }
  0xe7   :  { %v130_v12 = vadd.f32 %v129_v11, %v58_v10 }
  0xe8   :  { %v435_v13 = vpop.f32.mrf.mxu0 }
  0xe9   :  { %v133_v14 = vmax.f32 %v130_v12, 0.0 }
  0xeb   :  { %v135_v15 = vsel %vm134_vm2, %v133_v14, 0.0 }
  0xec   :  { %136 = vadd.xlane.f32.xlu0 %v135_v15 }
 0x175   :  { %v137_v16 = vpop.xlane.xlu0 %136 }
 0x176   :  { %v139_v17 = vmul.f32 0.015625, %v137_v16 }
 0x178   :  { %v140_v18 = vsub.f32 %v133_v14, %v139_v17 }
 0x17a   :  { %v141_v19 = vmul.f32 %v140_v18, %v140_v18 }
 0x17c   :  { %v142_v20 = vsel %vm134_vm2, %v141_v19, 0.0 }
 0x17d   :  { %143 = vadd.xlane.f32.xlu0 %v142_v20 }
 0x206   :  { %v144_v29 = vpop.xlane.xlu0 %143 }
 0x207   :  { %v145_v30 = vmul.f32 0.015625, %v144_v29 }
 0x209   :  { %v146_v31 = vadd.f32 1e-05, %v145_v30 }
 0x20b   :  { %481 = vrsqrt.f32 %v146_v31 }
 0x218   :  { %v482_v35 = vpop.eup %481 }
 0x219   :  { %v148_v37 = vmul.f32 %v482_v35, %v140_v18 }
 0x21b   :  { %v153_v38 = vmul.f32 %v152_v34, %v148_v37 }
 0x21d   :  { %v158_v39 = vadd.f32 %v157_v36, %v153_v38 }
 0x21f   :  { %453 = vmatmul.mubr.msk.f32.vlgmr.msra.gmra.mxu1 %vm134_vm2, %v158_v39 }
 0x2df   :  { %v241_v42 = vpop.f32.mrf.mxu1 }
 0x2e0   :  { %v242_v43 = vadd.f32 %v241_v42, %v171_v41 }
 0x2e1   :  { %v454_v44 = vpop.f32.mrf.mxu1 }
 0x2e2   :  { %v245_v45 = vmax.f32 %v242_v43, 0.0 }
 0x2e4   :  { %v246_v46 = vsel %vm134_vm2, %v245_v45, 0.0 }
 0x2e5   :  { %247 = vadd.xlane.f32.xlu1 %v246_v46 }
 0x36e   :  { %v248_v47 = vpop.xlane.xlu1 %247 }
 0x36f   :  { %v249_v48 = vmul.f32 0.015625, %v248_v47 }
 0x371   :  { %v250_v49 = vsub.f32 %v245_v45, %v249_v48 }
 0x373   :  { %v251_v50 = vmul.f32 %v250_v49, %v250_v49 }
 0x375   :  { %v252_v51 = vsel %vm134_vm2, %v251_v50, 0.0 }
 0x376   :  { %253 = vadd.xlane.f32.xlu1 %v252_v51 }
 0x3ff   :  { %v254_v60 = vpop.xlane.xlu1 %253 }
 0x400   :  { %v255_v61 = vmul.f32 0.015625, %v254_v60 }
 0x402   :  { %v256_v62 = vadd.f32 1e-05, %v255_v61 }
 0x404   :  { %483 = vrsqrt.f32 %v256_v62 }
 0x411   :  { %v484_v1 = vpop.eup %483 }
 0x412   :  { %v258_v3 = vmul.f32 %v484_v1, %v250_v49 }
 0x414   :  { %v263_v4 = vmul.f32 %v262_v63, %v258_v3 }
 0x416   :  { %v268_v5 = vadd.f32 %v267_v2, %v263_v4 }
 0x418   :  { %472 = vmatmul.mubr.msk.f32.vlgmr.msra.gmra.mxu0 %vm134_vm2, %v268_v5 }
 0x4d8   :  { %v353_v7 = vpop.f32.mrf.mxu0 }
 0x4d9   :  { %v354_v9 = vadd.f32 %v353_v7, %v283_v0 }
 0x4da   :  { %v473_v10 = vpop.f32.mrf.mxu0 }
 0x4db   :  { %v357_v11 = vmax.f32 %v354_v9, 0.0 }
 0x4dd   :  { %v358_v12 = vsel %vm134_vm2, %v357_v11, 0.0 }
 0x4de   :  { %359 = vadd.xlane.f32.xlu0 %v358_v12 }
 0x567   :  { %v360_v13 = vpop.xlane.xlu0 %359 }
 0x568   :  { %v361_v14 = vmul.f32 0.015625, %v360_v13 }
 0x56a   :  { %v362_v15 = vsub.f32 %v357_v11, %v361_v14 }
 0x56c   :  { %v363_v16 = vmul.f32 %v362_v15, %v362_v15 }
 0x56e   :  { %v364_v17 = vsel %vm134_vm2, %v363_v16, 0.0 }
 0x56f   :  { %365 = vadd.xlane.f32.xlu1 %v364_v17 }
 0x5f8   :  { %v366_v18 = vpop.xlane.xlu1 %365 }
 0x5f9   :  { %v367_v19 = vmul.f32 0.015625, %v366_v18 }
 0x5fb   :  { %v368_v20 = vadd.f32 1e-05, %v367_v19 }
 0x5fd   :  { %485 = vrsqrt.f32 %v368_v20 }
 0x60a   :  { %v486_v21 = vpop.eup %485 }
 0x60b   :  { %v370_v23 = vmul.f32 %v486_v21, %v362_v15 }
 0x60d   :  { %v375_v24 = vmul.f32 %v374_v8, %v370_v23 }
 0x60f   :  { %v380_v25 = vadd.f32 %v379_v22, %v375_v24 }
 0x611   :  { %381 = vst.msk [vmem:[#allocation7] sm:$0xff] %vm134_vm2, %v380_v25 }
 0x612   :  { %538 = shalt.err (!%p535_p0)
}
 0x613   :  { %391 = dma.vmem_to_hbm [thread:$0]  %s389_s9, 128, %s666_s5, [#allocation4]  }
 0x614   :  { %551 = dma.done.wait [#allocation4], 128  }
 0x615   :  { %552 = vsyncadd [#allocation4], 4294967168 }
 0x616   :  { %395 = vsyncpa [#allocation3], 1 }
 0x617   :  { %396 = vsyncpa [#allocation6], 1 }
 0x618   :  { %397 = vsyncpa [#allocation4], 1 }

</bundles_post_ra>
